<compile_context>
chip_gen: v7x
topology: tpu7x:2x2x1
jax: 0.10.0
libtpu: 0.0.40
codegen_flags: <defaults>
</compile_context>

<pallas_src>
import jax
import jax.numpy as jnp
from jax.experimental import pallas as pl
from jax.experimental.pallas import tpu as pltpu


def _cdiv(a, b):
    return (a + b - 1) // b


def _round_up(a, b):
    return _cdiv(a, b) * b


def _pick_row_block(h, lane, itemsize, vmem_budget_bytes=8 * 1024 * 1024):
    """Pick TY: 8/16-aligned row-block height, as large as the VMEM budget allows.

    ~6 (TY, lane) buffers are live per grid step (double-buffered x-in and out plus the
    double-buffered table slab), so we budget against 6 * TY * lane * itemsize.  Kept
    conservative so it fits v5e's 16 MiB and v7x's 32 MiB default scoped VMEM.
    """
    align = 8 if itemsize >= 4 else (16 if itemsize == 2 else 32)
    per_row = lane * itemsize * 6
    cap = max(align, (vmem_budget_bytes // max(per_row, 1)) // align * align)
    ty = min(cap, _round_up(h, align))
    # Keep at least two row blocks when h allows it, so the "parallel" row grid can be
    # split across v7x's two TensorCores (neutral on single-TC v5e/v6e).
    if ty >= h and h > align:
        ty = max(align, _round_up(_cdiv(h, 2), align))
    return ty


def _encode_add_kernel(x_ref, slab_ref, scale_ref, o_ref):
    # x_ref / o_ref : (1, TY, LANE)   patch-embedding rows of one batch element
    # slab_ref      : (TY, LANE)      spatial-hash table rows for these patch rows
    # scale_ref     : (1, LANE)       scale embedding tiled along the lane axis
    enc = slab_ref[...] + scale_ref[...]                 # sublane-broadcast add
    o_ref[...] = (x_ref[...] + enc[None]).astype(o_ref.dtype)


def fused_spatial_scale_add(x, spatial_table, scale_vec, h, w, hash_size,
                            out_dtype=None):
    """out[b, y*w + x_, :] = x[b, y*w + x_, :]
                             + spatial_table[(y % hash)*hash + (x_ % hash), :]
                             + scale_vec
    (== PatchEmbed output + HashBasedSpatialEncoding + ScaleEncoding in MUSIQ).
    """
    B, seq, d_model = x.shape
    assert seq == h * w
    assert spatial_table.shape == (hash_size * hash_size, d_model)
    assert scale_vec.shape == (d_model,)
    out_dtype = x.dtype if out_dtype is None else out_dtype

    lane = w * d_model
    itemsize = max(jnp.dtype(x.dtype).itemsize,
                   jnp.dtype(spatial_table.dtype).itemsize,
                   jnp.dtype(out_dtype).itemsize)
    ty = _pick_row_block(h, lane, itemsize)
    grid_y = _cdiv(h, ty)

    x3 = x.reshape(B, h, lane)                                         # free view
    scale_row = jnp.tile(scale_vec.astype(spatial_table.dtype), (w,)).reshape(1, lane)

    # Fast path (covers every real MUSIQ config: h, w << hash_size=256, d_model=768):
    # the needed rows form a rectangular sub-block of the row-major (hash, hash*d)
    # table view, so the kernel reads straight from the embedding table and nothing of
    # size (h*w, d_model) is ever materialized in HBM.
    fast = (h <= hash_size) and (w <= hash_size) and (lane % 128 == 0)
    if fast:
        slab = spatial_table.reshape(hash_size, hash_size * d_model)   # free view
    else:
        # Wrap / odd-d_model fallback: build the tiny (grid_y*ty, w*d_model) per-row
        # slab once outside the kernel (still read only ~once by the kernel because
        # batch is the inner grid axis).
        h_pad = grid_y * ty
        yi = jnp.arange(h_pad) % hash_size
        xi = jnp.arange(w) % hash_size
        idx = (yi[:, None] * hash_size + xi[None, :]).reshape(-1)
        slab = spatial_table[idx].reshape(h_pad, lane)

    out3 = pl.pallas_call(
        _encode_add_kernel,
        out_shape=jax.ShapeDtypeStruct((B, h, lane), out_dtype),
        grid=(grid_y, B),      # batch innermost -> table slab block reused across batch
        in_specs=[
            pl.BlockSpec((1, ty, lane), lambda i, b: (b, i, 0)),   # x rows
            pl.BlockSpec((ty, lane), lambda i, b: (i, 0)),         # table slab rows
            pl.BlockSpec((1, lane), lambda i, b: (0, 0)),          # scale row (resident)
        ],
        out_specs=pl.BlockSpec((1, ty, lane), lambda i, b: (b, i, 0)),
        compiler_params=pltpu.CompilerParams(
            dimension_semantics=("parallel", "parallel"),
        ),
    )(x3, slab, scale_row)

    return out3.reshape(B, seq, d_model)


# ---------------------------------------------------------------------------
# Plain-XLA surroundings (not Pallas) + pure-JAX reference for the fused add.
# ---------------------------------------------------------------------------

def patch_embed(img, w_conv, b_conv, patch_size):
    # TODO(synk): Conv2d patch embedding left to XLA's dense conv (no Pallas gain here).
    y = jax.lax.conv_general_dilated(
        img, w_conv, window_strides=(patch_size, patch_size), padding="VALID",
        dimension_numbers=("NCHW", "OIHW", "NCHW"))
    y = y + b_conv[None, :, None, None]
    B, D, Hp, Wp = y.shape
    return y.reshape(B, D, Hp * Wp).transpose(0, 2, 1), Hp, Wp


def encode_add_reference(x, table, scale_vec, h, w, hash_size):
    yi = jnp.arange(h) % hash_size
    xi = jnp.arange(w) % hash_size
    idx = (yi[:, None] * hash_size + xi[None, :]).reshape(-1)
    enc = table[idx] + scale_vec[None, :]
    return x + enc[None, :, :]


if __name__ == "__main__":
    key = jax.random.PRNGKey(0)
    k = jax.random.split(key, 12)

    # --- MUSIQ-like small config: 2 scales, Conv patch embed feeds the fused kernel ---
    B, C, d_model, patch, hash_size, max_scales = 2, 3, 128, 8, 16, 10
    table = 0.02 * jax.random.normal(k[0], (hash_size * hash_size, d_model), jnp.float32)
    scale_table = 0.02 * jax.random.normal(k[1], (max_scales, d_model), jnp.float32)
    w_conv = 0.02 * jax.random.normal(k[2], (d_model, C, patch, patch), jnp.float32)
    b_conv = jnp.zeros((d_model,), jnp.float32)

    for scale_idx, img_size in enumerate((32, 64)):        # -> 4x4 and 8x8 patch grids
        img = jax.random.normal(k[3 + scale_idx], (B, C, img_size, img_size), jnp.float32)
        patches, hp, wp = patch_embed(img, w_conv, b_conv, patch)
        scale_vec = scale_table[scale_idx]
        out = jax.block_until_ready(
            fused_spatial_scale_add(patches, table, scale_vec, hp, wp, hash_size))
        ref = encode_add_reference(patches, table, scale_vec, hp, wp, hash_size)
        assert out.shape == (B, hp * wp, d_model), out.shape
        assert jnp.allclose(out, ref, atol=1e-5, rtol=1e-5), "mismatch (fast path)"

    # --- hash_size not a multiple of 8 (review concern), still fast path ---
    hs3, h3, w3 = 10, 7, 7
    table3 = jax.random.normal(k[6], (hs3 * hs3, d_model), jnp.float32)
    x3 = jax.random.normal(k[7], (B, h3 * w3, d_model), jnp.float32)
    sv3 = scale_table[2]
    out3 = jax.block_until_ready(
        fused_spatial_scale_add(x3, table3, sv3, h3, w3, hs3))
    ref3 = encode_add_reference(x3, table3, sv3, h3, w3, hs3)
    assert jnp.allclose(out3, ref3, atol=1e-5, rtol=1e-5), "mismatch (hash=10 path)"

    # --- Wrap path: h > hash_size and w > hash_size exercises the fallback slab ---
    h2, w2, hash2, d2, b2 = 10, 14, 6, 64, 1
    table2 = jax.random.normal(k[8], (hash2 * hash2, d2), jnp.float32)
    scale2 = jax.random.normal(k[9], (d2,), jnp.float32)
    x2 = jax.random.normal(k[10], (b2, h2 * w2, d2), jnp.float32)
    out2 = jax.block_until_ready(
        fused_spatial_scale_add(x2, table2, scale2, h2, w2, hash2))
    ref2 = encode_add_reference(x2, table2, scale2, h2, w2, hash2)
    assert out2.shape == (b2, h2 * w2, d2), out2.shape
    assert jnp.allclose(out2, ref2, atol=1e-5, rtol=1e-5), "mismatch (wrap path)"

    # TODO(synk): cls-token concat, 12-layer nn.TransformerEncoder and the MLP head are
    # standard dense compute left to XLA / a dedicated attention kernel.
    print("KERNEL_OK")
</pallas_src>

<mosaic_0001>
module attributes {stable_mosaic.version = 11 : i64} {
  func.func @_encode_add_kernel(%arg0: i32, %arg1: i32, %arg2: memref<1x8x512xf32, #tpu.memory_space<vmem>>, %arg3: memref<8x512xf32, #tpu.memory_space<vmem>>, %arg4: memref<1x512xf32, #tpu.memory_space<vmem>>, %arg5: memref<1x8x512xf32, #tpu.memory_space<vmem>>) attributes {dimension_semantics = [#tpu.dimension_semantics<parallel>, #tpu.dimension_semantics<parallel>], iteration_bounds = array<i64: 1, 2>, scalar_prefetch = 0 : i64, scratch_operands = 0 : i64, tpu.core_type = #tpu.core_type<tc>, window_params = [{transform_indices = @transform_0, window_bounds = array<i64: 1, 8, 512>}, {transform_indices = @transform_1, window_bounds = array<i64: 8, 512>}, {pipeline_mode = #tpu.pipeline_mode<synchronous>, transform_indices = @transform_2, window_bounds = array<i64: 1, 512>}, {transform_indices = @transform_3, window_bounds = array<i64: 1, 8, 512>}]} {
    %c0 = arith.constant 0 : index
    %c0_0 = arith.constant 0 : index
    %0 = vector.load %arg3[%c0, %c0_0] : memref<8x512xf32, #tpu.memory_space<vmem>>, vector<8x512xf32>
    %c0_1 = arith.constant 0 : index
    %c0_2 = arith.constant 0 : index
    %1 = vector.load %arg4[%c0_1, %c0_2] : memref<1x512xf32, #tpu.memory_space<vmem>>, vector<1x512xf32>
    %2 = vector.broadcast %1 : vector<1x512xf32> to vector<8x512xf32>
    %3 = arith.addf %0, %2 : vector<8x512xf32>
    %c0_3 = arith.constant 0 : index
    %c0_4 = arith.constant 0 : index
    %c0_5 = arith.constant 0 : index
    %4 = vector.load %arg2[%c0_3, %c0_4, %c0_5] : memref<1x8x512xf32, #tpu.memory_space<vmem>>, vector<1x8x512xf32>
    %5 = vector.shape_cast %3 : vector<8x512xf32> to vector<1x8x512xf32>
    %6 = arith.addf %4, %5 : vector<1x8x512xf32>
    %c0_6 = arith.constant 0 : index
    %c0_7 = arith.constant 0 : index
    %c0_8 = arith.constant 0 : index
    %7 = vector.load %arg5[%c0_6, %c0_7, %c0_8] : memref<1x8x512xf32, #tpu.memory_space<vmem>>, vector<1x8x512xf32>
    tpu.vector_store %arg5[%c0_6, %c0_7, %c0_8], %6 {strides = array<i32>} : memref<1x8x512xf32, #tpu.memory_space<vmem>>, vector<1x8x512xf32>,
    return
  }
  func.func @transform_0(%arg0: i32, %arg1: i32) -> (i32, i32, i32) {
    %c0_i32 = arith.constant 0 : i32
    %c0_i32_0 = arith.constant 0 : i32
    return %arg1, %arg0, %c0_i32 : i32, i32, i32
  }
  func.func @transform_1(%arg0: i32, %arg1: i32) -> (i32, i32) {
    %c0_i32 = arith.constant 0 : i32
    %c0_i32_0 = arith.constant 0 : i32
    return %arg0, %c0_i32 : i32, i32
  }
  func.func @transform_2(%arg0: i32, %arg1: i32) -> (i32, i32) {
    %c0_i32 = arith.constant 0 : i32
    %c0_i32_0 = arith.constant 0 : i32
    %c0_i32_1 = arith.constant 0 : i32
    return %c0_i32, %c0_i32_0 : i32, i32
  }
  func.func @transform_3(%arg0: i32, %arg1: i32) -> (i32, i32, i32) {
    %c0_i32 = arith.constant 0 : i32
    %c0_i32_0 = arith.constant 0 : i32
    return %arg1, %arg0, %c0_i32 : i32, i32, i32
  }
}

</mosaic_0001>

<bundles_post_ra>
// kernel: tpu_custom_call.1
= control target key start
LH: loop header
LB: loop body
LE: loop exit
PB: predicated region body
PF: predicated region fallthrough
CT: control target
= control target key end

     0   :  { %8 = vsyncpa [#allocation3], 0  ;;  %s866_s0 = inlined_call_operand.hbm [shape: f32[2,4,512], index: 0, kind: input, shape index: {}]   ;;  %s867_s1 = inlined_call_operand.hbm [shape: f32[16,2048], index: 1, kind: input, shape index: {}]   ;;  %s868_s2 = inlined_call_operand.vmem [shape: f32[1,512], index: 2, kind: input, shape index: {}]   ;;  %s869_s3 = inlined_call_operand.hbm [shape: f32[2,4,512], index: 3, kind: output, shape index: {}]  }
   0x1   :  { %10 = vsyncpa [#allocation3 + $0x1], 0 }
   0x2   :  { %11 = vsyncpa [#allocation6], 0 }
   0x3   :  { %12 = vsyncpa [#allocation4], 0 }
   0x4   :  { %14 = vsyncpa [#allocation4 + $0x1], 0  ;;  %s669_s12 = smov 0   ;;  %s671_s13 = smov 0  }
   0x5   :  { %s673_s14 = smov 0   ;;  %s675_s15 = smov 0  }
   0x6   :  { %s677_s16 = smov 0   ;;  %s679_s17 = smov 0  }
   0x7 LB: > { %s417_s18 = sadd.s32 4294967295, %s640_s17   ;;  %s418_s19 = sadd.s32 4294967294, %s640_s17   ;;  %s640_s17 = sphi %s679_s17, %s20_s17   ;;  %s636_s16 = sphi %s677_s16, %s891_s16   ;;  %s632_s15 = sphi %s675_s15, %s890_s15   ;;  %s628_s14 = sphi %s673_s14, %s889_s14   ;;  %s624_s13 = sphi %s671_s13, %s888_s13   ;;  %s620_s12 = sphi %s669_s12, %s887_s12  }
   0x8   : > { %s29_s20 = sadd.s32 1, %s636_s16  ;;  %s41_s21 = sadd.s32 1, %s628_s14 }
   0x9   : > { %p30_p0 = scmp.ge.s32.totalorder %s29_s20, 2  ;;  %p48_p1 = scmp.ne.s32.totalorder %s628_s14, %s624_s13 }
   0xa   : > { %p49_p2 = scmp.eq.s32.totalorder %s640_s17, 0  ;;  %p54_p3 = scmp.ne.s32.totalorder %s624_s13, %s620_s12 }
   0xb   : > { %s893_s20 = smov (%p30_p0, %s29_s20), 0  ;;  %p714_p5 = scmp.eq.s32.totalorder %s417_s18, 0 }
   0xc   : > { %p710_p4 = por %p49_p2, %p48_p1  ;;  %s36_s24 = ssub.s32 %s636_s16, %s893_s20 }
   0xd   : > { %s875_s23 = scalar_select %p714_p5, 1, 0 }
   0xe   : > { %s874_s22 = scalar_select %p710_p4, 1, 0 }
   0xf   : > { %p127_p6 = scmp.eq.s32.totalorder %s417_s18, 1  ;;  %p39_p7 = scmp.eq.s32.totalorder %s36_s24, 0 }
  0x10   : > { %p722_p8 = por %p714_p5, %p54_p3  ;;  %p133_p10 = scmp.eq.s32.totalorder %s418_s19, 1 }
  0x11   : > { %p726_p9 = por %p127_p6, %p48_p1  ;;  %p419_p12 = scmp.ge.s32.totalorder %s640_s17, 1 }
  0x12   : > { %s876_s25 = scalar_select %p722_p8, 1, 0 }
  0x13   : > { %s877_s26 = scalar_select %p726_p9, 1, 0 }
  0x14   : > { %s731_s27 = scalar_select %p39_p7, %s628_s14, %s41_s21  }
  0x15   : > { %p733_p11 = por %p133_p10, %p54_p3  ;;  %p140_p13 = scmp.lt.s32.totalorder %s640_s17, 3 }
  0x16   : > { %s642_s30 = smov [#allocation5]   ;;  %s506_s8 = scalar_lea.hbm %s867_s1, 512 }
  0x17   : > { %s878_s28 = scalar_select %p733_p11, 1, 0 }
  0x18   : > { %p739_p0 = pnand %p419_p12, %p140_p13  ;;  %s156_s4 = sshll.u32 %s642_s30, 4  ;;  %s157_s4 = int_to_ptr.vmem [resolvable:$true] %s156_s4 }
  0x19   : > { %p507_p3 = scmp.ne.s32.totalorder %s867_s1, %s506_s8  ;;  %s511_s19 = scalar_lea.hbm %s867_s1, 4096 }
  0x1a   : > { %s879_s29 = scalar_select %p739_p0, 1, 0 }
  0x1b   : > { %p442_p1 = pneg %p739_p0  ;;  %p512_p12 = scmp.lt.u32.totalorder %s511_s19, %s506_s8 }
  0x1c   : > { %p513_p13 = scmp.lt.u32.totalorder %s506_s8, %s867_s1 }
  0x1d   : > { %p747_p2 = pnand %p442_p1, %p714_p5 }
  0x1e   : > { %p514_p1 = por %p513_p13, %p512_p12 }
  0x1f   : > { %p508_p6 = pneg %p747_p2 }
  0x21   : > { %p509_p7 = pnand %p508_p6, %p507_p3 }
  0x23   : > { %p510_p10 = pneg %p509_p7 }
  0x25   : > { %p515_p11 = pnand %p514_p1, %p510_p10 }
  0x27   : > { %518 = shalt.err (!%p515_p11)
}
  0x28   : > { %s519_s30 = scalar_lea.vmem %s157_s4, 512  ;;  %p527_p0 = scmp.lt.s32.totalorder %s157_s4, %s157_s4 }
  0x29   : > { %p520_p9 = scmp.ne.s32.totalorder %s157_s4, %s519_s30  ;;  %p528_p4 = scmp.lt.s32.totalorder %s519_s30, %s519_s30 }
  0x2b   : > { %p522_p5 = pnand %p520_p9, %p508_p6  ;;  %p529_p3 = por %p528_p4, %p527_p0 }
  0x2d   : > { %p523_p8 = pneg %p522_p5 }
  0x2f   : > { %p530_p7 = pnand %p529_p3, %p523_p8 }
  0x31   : > { %533 = shalt.err (!%p530_p7)
}
  0x32   : > { %445 = dma.hbm_to_vmem [thread:$0]  (!%p747_p2), %s867_s1, 512, %s157_s4, [#allocation6]  }
  0x33   : > { %p421_p12 = scmp.ge.s32.totalorder %s640_s17, 2 }
  0x34   : > { %p881_p11 = scmp.ne.s32.totalorder (!%p421_p12), %s874_s22, 0 }
  0x35   : > { %166 = sbr.rel (%p421_p12) target bundleno = 91 (0x5b), region = 24 }
  0x3c   : > { %169 = sbr.rel (!%p881_p11) target bundleno = 91 (0x5b), region = 28  ;;  %s170_s8 = sand.u32 (%p881_p11), 1, %s628_s14  }
  0x3d   : > { %s422_s9 = sshll.u32 (%p881_p11), %s170_s8, 5  ;;  %s776_s10 = scalar_lea.sflag (%p881_p11), [#allocation3], %s170_s8 }
  0x3e   : > { %s174_s11 = scalar_lea.vmem (%p881_p11), [#allocation2], %s422_s9 }
  0x43   : > { %181 = vsyncadd %s776_s10, 256  ;;  %s434_s5 = sshll.u32 %s636_s16, 8  ;;  %s189_s18 = sshll.u32 %s174_s11, 4  ;;  %s190_s18 = int_to_ptr.vmem [resolvable:$true] %s189_s18 }
  0x44   : > { %s783_s21 = scalar_lea.hbm %s866_s0, %s434_s5  ;;  %s536_s6 = scalar_lea.hbm %s866_s0, 512 }
  0x45   : > { %s534_s22 = scalar_lea.hbm %s783_s21, 256  ;;  %p537_p5 = scmp.lt.u32.totalorder %s783_s21, %s866_s0 }
  0x46   : > { %p535_p4 = scmp.ne.s32.totalorder %s783_s21, %s534_s22  ;;  %p538_p8 = scmp.lt.u32.totalorder %s536_s6, %s534_s22 }
  0x47   : > { %p540_p0 = scmp.lt.u32.totalorder %s534_s22, %s783_s21 }
  0x48   : > { %p539_p9 = por %p538_p8, %p537_p5 }
  0x4a   : > { %p541_p2 = por %p540_p0, %p539_p9 }
  0x4c   : > { %p542_p6 = pnand %p541_p2, %p535_p4 }
  0x4e   : > { %545 = shalt.err (!%p542_p6)
}
  0x4f   : > { %s546_s9 = scalar_lea.vmem %s190_s18, 256  ;;  %s643_s11 = smov [#allocation2]  }
  0x50   : > { %p547_p10 = scmp.ne.s32.totalorder %s190_s18, %s546_s9  ;;  %s548_s5 = sshll.u32 %s643_s11, 4  ;;  %s549_s5 = int_to_ptr.vmem [resolvable:$false] %s548_s5 }
  0x51   : > { %s550_s4 = scalar_lea.vmem %s549_s5, 1024  ;;  %p551_p13 = scmp.lt.s32.totalorder %s190_s18, %s549_s5 }
  0x52   : > { %p552_p1 = scmp.lt.s32.totalorder %s550_s4, %s546_s9 }
  0x54   : > { %p553_p3 = por %p552_p1, %p551_p13 }
  0x56   : > { %p554_p7 = pnand %p553_p3, %p547_p10 }
  0x58   : > { %557 = shalt.err (!%p554_p7)
}
  0x59   : > { %s644_s19 = smov 256   ;;  %s645_s24 = smov 16  }
  0x5a   : > { %195 = dma.hbm_to_vmem [thread:$0]  %s783_s21, 256, %s190_s18, %s776_s10, %s644_s19, %s644_s19, %s645_s24  }
  0x5b PF: > { %p882_p11 = scmp.ne.s32.totalorder %s879_s29, 0 }
  0x5c   : > { %s800_s22 = sand.u32 (!%p882_p11), 1, %s624_s13   ;;  %p883_p4 = scmp.ne.s32.totalorder (!%p882_p11), %s876_s25, 0 }
  0x5d   : > { %201 = sbr.rel (%p882_p11) target bundleno = 145 (0x91), region = 32  ;;  %s426_s30 = sshll.u32 (!%p882_p11), %s800_s22, 5 }
  0x5e   : > { %s204_s6 = scalar_lea.sflag (!%p882_p11), [#allocation3], %s800_s22  ;;  %s207_s7 = scalar_lea.vmem (!%p882_p11), [#allocation2], %s426_s30 }
  0x64   : > { %607 = dma.done.wait (%p883_p4), %s204_s6, 512  }
  0x65   : > { %609 = vsyncadd (%p883_p4), %s204_s6, 4294966784  ;;  %p884_p5 = scmp.ne.s32.totalorder %s875_s23, 0 }
  0x67   : > { %611 = dma.done.wait (%p884_p5), [#allocation6], 512  }
  0x68   : > { %613 = vsyncadd (%p884_p5), [#allocation6], 4294966784  ;;  %v248_v0 = vlaneseq  ;;  %v242_v6 = vld [vmem:[#allocation5] sm:$0xff]  ;;  %v243_v7 = vld [vmem:[#allocation5 + $0x8] sm:$0xff]  ;;  %s233_s23 = scalar_lea.vmem [#allocation7], %s426_s30  ;;  %s297_s25 = scalar_lea.sflag [#allocation4], %s800_s22 }
  0x69   : > { %v246_v8 = vld [vmem:[%s868_s2] sm:$0xf]  ;;  %v244_v11 = vld [vmem:[#allocation5 + $0x10] sm:$0xff]  ;;  %v245_v12 = vld [vmem:[#allocation5 + $0x18] sm:$0xff]  ;;  %p885_p8 = scmp.ne.s32.totalorder %s877_s26, 0 }
  0x6a   : > { %v249_v1 = vshrl.u32 %v248_v0, 7  ;;  %v272_v17 = vld [vmem:[%s207_s7] sm:$0xff]  ;;  %v273_v20 = vld [vmem:[%s207_s7 + $0x8] sm:$0xff]  ;;  %v274_v21 = vld [vmem:[%s207_s7 + $0x10] sm:$0xff] }
  0x6b   : > { %v275_v22 = vld [vmem:[%s207_s7 + $0x18] sm:$0xff] }
  0x6c   : > { %v250_v2 = vsub.s32 0, %v249_v1  ;;  %v254_v3 = vsub.s32 1, %v249_v1  ;;  %v258_v4 = vsub.s32 2, %v249_v1  ;;  %v262_v5 = vsub.s32 3, %v249_v1 }
  0x6e   : > { %v251_v9 = vrot.slane %v246_v8, %v250_v2  ;;  %v255_v10 = vrot.slane %v246_v8, %v254_v3  ;;  %v259_v13 = vrot.slane %v246_v8, %v258_v4  ;;  %v263_v14 = vrot.slane %v246_v8, %v262_v5 }
  0x70   : > { %v268_v15 = vadd.f32 %v251_v9, %v242_v6  ;;  %v269_v16 = vadd.f32 %v255_v10, %v243_v7  ;;  %v270_v18 = vadd.f32 %v259_v13, %v244_v11  ;;  %v271_v19 = vadd.f32 %v263_v14, %v245_v12 }
  0x71   : > { %303 = sbr.rel (!%p885_p8) target bundleno = 145 (0x91), region = 44 }
  0x72   : > { %v280_v23 = vcombine.low %v268_v15, %v269_v16  ;;  %v282_v24 = vcombine.low %v270_v18, %v271_v19  ;;  %v281_v25 = vcombine.high %v268_v15, %v269_v16  ;;  %v283_v26 = vcombine.high %v270_v18, %v271_v19 }
  0x74   : > { %v288_v27 = vadd.f32 %v280_v23, %v272_v17  ;;  %v289_v28 = vadd.f32 %v282_v24, %v273_v20  ;;  %v290_v29 = vadd.f32 %v281_v25, %v274_v21  ;;  %v291_v30 = vadd.f32 %v283_v26, %v275_v22 }
  0x76   : > { %292 = vst [vmem:[%s233_s23] sm:$0xff] %v288_v27  ;;  %293 = vst [vmem:[%s233_s23 + $0x8] sm:$0xff] %v289_v28 }
  0x77   : > { %294 = vst [vmem:[%s233_s23 + $0x10] sm:$0xff] %v290_v29  ;;  %295 = vst [vmem:[%s233_s23 + $0x18] sm:$0xff] %v291_v30 }
  0x78   : > { %310 = vsyncadd %s297_s25, 256  ;;  %s435_s18 = sshll.u32 %s632_s15, 8  ;;  %s318_s21 = sshll.u32 %s233_s23, 4  ;;  %s319_s21 = int_to_ptr.vmem [resolvable:$true] %s318_s21 }
  0x79   : > { %s828_s11 = scalar_lea.hbm %s869_s3, %s435_s18  ;;  %s558_s5 = scalar_lea.vmem %s319_s21, 256 }
  0x7a   : > { %p559_p9 = scmp.ne.s32.totalorder %s319_s21, %s558_s5  ;;  %s646_s4 = smov [#allocation7]  }
  0x7b   : > { %s560_s19 = sshll.u32 %s646_s4, 4  ;;  %s561_s19 = int_to_ptr.vmem [resolvable:$false] %s560_s19 }
  0x7c   : > { %s562_s24 = scalar_lea.vmem %s561_s19, 1024  ;;  %p563_p0 = scmp.lt.s32.totalorder %s319_s21, %s561_s19 }
  0x7d   : > { %p564_p2 = scmp.lt.s32.totalorder %s562_s24, %s558_s5 }
  0x7f   : > { %p565_p6 = por %p564_p2, %p563_p0 }
  0x81   : > { %p566_p10 = pnand %p565_p6, %p559_p9 }
  0x83   : > { %569 = shalt.err (!%p566_p10)
}
  0x84   : > { %s570_s15 = scalar_lea.hbm %s828_s11, 256  ;;  %s572_s6 = scalar_lea.hbm %s869_s3, 512 }
  0x85   : > { %p571_p13 = scmp.ne.s32.totalorder %s828_s11, %s570_s15  ;;  %p573_p1 = scmp.lt.u32.totalorder %s828_s11, %s869_s3 }
  0x86   : > { %p574_p3 = scmp.lt.u32.totalorder %s572_s6, %s570_s15  ;;  %p576_p11 = scmp.lt.u32.totalorder %s570_s15, %s828_s11 }
  0x88   : > { %p575_p7 = por %p574_p3, %p573_p1 }
  0x8a   : > { %p577_p4 = por %p576_p11, %p575_p7 }
  0x8c   : > { %p578_p5 = pnand %p577_p4, %p571_p13 }
  0x8e   : > { %581 = shalt.err (!%p578_p5)
}
  0x8f   : > { %s647_s10 = smov 256   ;;  %s648_s23 = smov 16  }
  0x90   : > { %324 = dma.vmem_to_hbm [thread:$0]  %s319_s21, 256, %s828_s11, %s297_s25, %s647_s10, %s647_s10, %s648_s23  }
  0x91 PF: > { %s333_s18 = sand.u32 1, %s620_s12   ;;  %p886_p8 = scmp.ne.s32.totalorder %s878_s28, 0 }
  0x92   : > { %s334_s8 = scalar_lea.sflag [#allocation4], %s333_s18 }
  0x93   : > { %p447_p9 = pnand %p421_p12, %p886_p8 }
  0x95   : > { %615 = dma.done.wait (!%p447_p9), %s334_s8, 512  }
  0x96   : > { %617 = vsyncadd (!%p447_p9), %s334_s8, 4294966784  ;;  %s20_s17 = sadd.s32 1, %s640_s17   ;;  %s887_s12 = smov %s624_s13 }
  0x97   : > { %p17_p0 = scmp.ge.s32.totalorder %s20_s17, 4   ;;  %s888_s13 = smov %s628_s14 }
  0x98   : > { %s889_s14 = smov %s731_s27  ;;  %s890_s15 = smov %s636_s16 }
  0x99   : > { %s891_s16 = smov %s893_s20  ;;  %19 = sbr.rel (!%p17_p0) target bundleno = 7 (0x7), region = 82 }
  0xa0   :  { %339 = vsyncpa [#allocation3], 1 }
  0xa1   :  { %341 = vsyncpa [#allocation3 + $0x1], 1 }
  0xa2   :  { %342 = vsyncpa [#allocation6], 1 }
  0xa3   :  { %343 = vsyncpa [#allocation4], 1 }
  0xa4   :  { %345 = vsyncpa [#allocation4 + $0x1], 1 }

</bundles_post_ra>
